<compile_context>
chip_gen: v7x
topology: tpu7x:2x2x1
jax: 0.10.0
libtpu: 0.0.40
codegen_flags: <defaults>
</compile_context>

<pallas_src>
import functools

import jax
import jax.numpy as jnp
from jax import lax
from jax.experimental import pallas as pl
from jax.experimental.pallas import tpu as pltpu


def _attention_kernel(x_ref, wq_ref, wk_ref, wv_ref, wo_ref, bias_ref,
                      out_ref, acc_ref):
    """One (batch, head) grid step.

    x_ref   : (1, N, C)  input activations (same block for every head of b)
    wq_ref  : (1, C, D)  q weights for this head (softmax scale pre-folded)
    wk_ref  : (1, C, D)  k weights for this head
    wv_ref  : (1, C, D)  v weights for this head
    wo_ref  : (1, D, C)  output-projection weights for this head
    bias_ref: (1, C)     output-projection bias
    out_ref : (1, N, C)  output activations (written at the last head)
    acc_ref : (N, C) f32 VMEM accumulator over heads
    """
    h = pl.program_id(1)
    num_heads = pl.num_programs(1)

    @pl.when(h == 0)
    def _():
        acc_ref[...] = jnp.zeros_like(acc_ref)

    x = x_ref[0]                                             # (N, C) native dtype
    in_dtype = x.dtype

    # Per-head projections on the MXU (contraction K = C is full width).
    q = jnp.dot(x, wq_ref[0], preferred_element_type=jnp.float32)   # (N, D)
    k = jnp.dot(x, wk_ref[0], preferred_element_type=jnp.float32)   # (N, D)
    v = jnp.dot(x, wv_ref[0], preferred_element_type=jnp.float32)   # (N, D)

    # Scores: contract the last dims directly (no explicit transpose of k).
    s = lax.dot_general(q.astype(in_dtype), k.astype(in_dtype),
                        (((1,), (1,)), ((), ())),
                        preferred_element_type=jnp.float32)          # (N, N)

    # Softmax in f32; normalization is deferred until after the PV matmul.
    s = s - jnp.max(s, axis=-1, keepdims=True)
    p = jnp.exp(s)
    l = jnp.sum(p, axis=-1, keepdims=True)                           # (N, 1)
    # TODO(synk): attention dropout omitted (inference semantics / identity).

    o = jnp.dot(p.astype(in_dtype), v.astype(in_dtype),
                preferred_element_type=jnp.float32)                  # (N, D)
    o = o * pl.reciprocal(l, approx=True)                            # post-PV norm

    # Accumulate this head's contribution to the output projection.
    acc_ref[...] += jnp.dot(o.astype(in_dtype), wo_ref[0],
                            preferred_element_type=jnp.float32)      # (N, C)

    @pl.when(h == num_heads - 1)
    def _():
        # TODO(synk): projection dropout omitted (inference semantics / identity).
        out_ref[0] = (acc_ref[...]
                      + bias_ref[...].astype(jnp.float32)).astype(out_ref.dtype)


def attention_forward(x, w_qkv, w_proj, b_proj, *, num_heads):
    """x: (B, N, C).  Torch-layout params: w_qkv (3C, C), w_proj (C, C), b_proj (C,)."""
    B, N, C = x.shape
    assert C % num_heads == 0
    D = C // num_heads
    scale = D ** (-0.5)

    # Host-side weight prep (glue): nn.Linear does x @ W.T; reshape to a
    # head-major layout so each head is a leading-dim slice inside the kernel,
    # and fold the softmax scale into the q weights (zero runtime cost).
    wq = jnp.transpose(w_qkv[0 * C:1 * C].reshape(num_heads, D, C), (0, 2, 1)) * scale
    wk = jnp.transpose(w_qkv[1 * C:2 * C].reshape(num_heads, D, C), (0, 2, 1))
    wv = jnp.transpose(w_qkv[2 * C:3 * C].reshape(num_heads, D, C), (0, 2, 1))
    wo = jnp.transpose(w_proj).reshape(num_heads, D, C)               # (H, D, C)
    bias = b_proj.reshape(1, C)

    return pl.pallas_call(
        _attention_kernel,
        out_shape=jax.ShapeDtypeStruct((B, N, C), x.dtype),
        grid_spec=pltpu.PrefetchScalarGridSpec(
            num_scalar_prefetch=0,
            grid=(B, num_heads),
            in_specs=[
                pl.BlockSpec((1, N, C), lambda b, h: (b, 0, 0)),   # x   (per batch)
                pl.BlockSpec((1, C, D), lambda b, h: (h, 0, 0)),   # wq  (per head)
                pl.BlockSpec((1, C, D), lambda b, h: (h, 0, 0)),   # wk  (per head)
                pl.BlockSpec((1, C, D), lambda b, h: (h, 0, 0)),   # wv  (per head)
                pl.BlockSpec((1, D, C), lambda b, h: (h, 0, 0)),   # wo  (per head)
                pl.BlockSpec((1, C), lambda b, h: (0, 0)),         # bias
            ],
            out_specs=pl.BlockSpec((1, N, C), lambda b, h: (b, 0, 0)),
            scratch_shapes=[pltpu.VMEM((N, C), jnp.float32)],
        ),
        compiler_params=pltpu.CompilerParams(
            # Batch shards across TensorCores (v7x megacore); heads are the
            # accumulation (reduction) axis and must stay "arbitrary".
            dimension_semantics=("parallel", "arbitrary")),
    )(x, wq, wk, wv, wo, bias)


def _reference(x, w_qkv, w_proj, b_proj, *, num_heads):
    B, N, C = x.shape
    D = C // num_heads
    scale = D ** (-0.5)
    qkv = jnp.einsum("bnc,oc->bno", x, w_qkv)               # (B, N, 3C)
    q, k, v = jnp.split(qkv, 3, axis=-1)

    def to_heads(t):
        return jnp.transpose(t.reshape(B, N, num_heads, D), (0, 2, 1, 3))

    q, k, v = map(to_heads, (q, k, v))
    q = q * scale
    attn = jnp.einsum("bhid,bhjd->bhij", q, k)
    attn = jax.nn.softmax(attn, axis=-1)
    o = jnp.einsum("bhij,bhjd->bhid", attn, v)
    o = jnp.transpose(o, (0, 2, 1, 3)).reshape(B, N, C)
    return jnp.einsum("bnc,oc->bno", o, w_proj) + b_proj


if __name__ == "__main__":
    # Small deterministic setup.
    B, N, C = 2, 8, 32
    NUM_HEADS = 4

    key = jax.random.PRNGKey(0)
    kx, kq, kp, kb = jax.random.split(key, 4)

    x = jax.random.normal(kx, (B, N, C), dtype=jnp.float32)
    # Parameter shapes follow nn.Linear: qkv.weight (3C, C), proj.weight (C, C), proj.bias (C,)
    w_qkv = 0.05 * jax.random.normal(kq, (3 * C, C), dtype=jnp.float32)
    w_proj = 0.05 * jax.random.normal(kp, (C, C), dtype=jnp.float32)
    b_proj = 0.05 * jax.random.normal(kb, (C,), dtype=jnp.float32)

    out = attention_forward(x, w_qkv, w_proj, b_proj, num_heads=NUM_HEADS)
    out = jax.block_until_ready(out)

    ref = _reference(x, w_qkv, w_proj, b_proj, num_heads=NUM_HEADS)
    assert out.shape == (B, N, C)
    # Tolerance loosened slightly because pl.reciprocal(approx=True) perturbs
    # the softmax normalization in the last few ulps.
    assert jnp.allclose(out, ref, rtol=1e-2, atol=1e-3), "mismatch vs. pure-JAX reference"

    print("KERNEL_OK")
</pallas_src>

<mosaic_0001>
module attributes {stable_mosaic.version = 11 : i64} {
  func.func @_attention_kernel(%arg0: i32, %arg1: i32, %arg2: memref<1x8x32xf32, #tpu.memory_space<vmem>>, %arg3: memref<1x32x8xf32, #tpu.memory_space<vmem>>, %arg4: memref<1x32x8xf32, #tpu.memory_space<vmem>>, %arg5: memref<1x32x8xf32, #tpu.memory_space<vmem>>, %arg6: memref<1x8x32xf32, #tpu.memory_space<vmem>>, %arg7: memref<1x32xf32, #tpu.memory_space<vmem>>, %arg8: memref<1x8x32xf32, #tpu.memory_space<vmem>>, %arg9: memref<8x32xf32, #tpu.memory_space<vmem>>) attributes {dimension_semantics = [#tpu.dimension_semantics<parallel>, #tpu.dimension_semantics<arbitrary>], iteration_bounds = array<i64: 2, 4>, scalar_prefetch = 0 : i64, scratch_operands = 1 : i64, tpu.core_type = #tpu.core_type<tc>, window_params = [{transform_indices = @transform_0, window_bounds = array<i64: 1, 8, 32>}, {transform_indices = @transform_1, window_bounds = array<i64: 1, 32, 8>}, {transform_indices = @transform_2, window_bounds = array<i64: 1, 32, 8>}, {transform_indices = @transform_3, window_bounds = array<i64: 1, 32, 8>}, {transform_indices = @transform_4, window_bounds = array<i64: 1, 8, 32>}, {pipeline_mode = #tpu.pipeline_mode<synchronous>, transform_indices = @transform_5, window_bounds = array<i64: 1, 32>}, {transform_indices = @transform_6, window_bounds = array<i64: 1, 8, 32>}]} {
    %c0_i32 = arith.constant 0 : i32
    %0 = arith.cmpi eq, %arg1, %c0_i32 : i32
    %1 = arith.extui %0 : i1 to i32
    %c0_i32_0 = arith.constant 0 : i32
    %2 = arith.cmpi ne, %1, %c0_i32_0 : i32
    scf.if %2 {
      %cst_27 = arith.constant 0.000000e+00 : f32
      %35 = vector.broadcast %cst_27 : f32 to vector<8x32xf32>
      %c0_28 = arith.constant 0 : index
      %c0_29 = arith.constant 0 : index
      %36 = vector.load %arg9[%c0_28, %c0_29] : memref<8x32xf32, #tpu.memory_space<vmem>>, vector<8x32xf32>
      tpu.vector_store %arg9[%c0_28, %c0_29], %35 {strides = array<i32>} : memref<8x32xf32, #tpu.memory_space<vmem>>, vector<8x32xf32>,
    } else {
    }
    %c0 = arith.constant 0 : index
    %c0_1 = arith.constant 0 : index
    %c0_2 = arith.constant 0 : index
    %3 = vector.load %arg2[%c0, %c0_1, %c0_2] : memref<1x8x32xf32, #tpu.memory_space<vmem>>, vector<1x8x32xf32>
    %4 = vector.shape_cast %3 : vector<1x8x32xf32> to vector<8x32xf32>
    %c0_3 = arith.constant 0 : index
    %c0_4 = arith.constant 0 : index
    %c0_5 = arith.constant 0 : index
    %5 = vector.load %arg3[%c0_3, %c0_4, %c0_5] : memref<1x32x8xf32, #tpu.memory_space<vmem>>, vector<1x32x8xf32>
    %6 = vector.shape_cast %5 : vector<1x32x8xf32> to vector<32x8xf32>
    %cst = arith.constant dense<0.000000e+00> : vector<8x8xf32>
    %7 = tpu.matmul %4, %6, %cst {dimension_numbers = #tpu.dot_dimension_numbers<[1], [0], [0], [1], [0, 0, 1, 1], [], []>} : vector<8x32xf32>, vector<32x8xf32>, vector<8x8xf32> -> vector<8x8xf32>
    %c0_6 = arith.constant 0 : index
    %c0_7 = arith.constant 0 : index
    %c0_8 = arith.constant 0 : index
    %8 = vector.load %arg4[%c0_6, %c0_7, %c0_8] : memref<1x32x8xf32, #tpu.memory_space<vmem>>, vector<1x32x8xf32>
    %9 = vector.shape_cast %8 : vector<1x32x8xf32> to vector<32x8xf32>
    %cst_9 = arith.constant dense<0.000000e+00> : vector<8x8xf32>
    %10 = tpu.matmul %4, %9, %cst_9 {dimension_numbers = #tpu.dot_dimension_numbers<[1], [0], [0], [1], [0, 0, 1, 1], [], []>} : vector<8x32xf32>, vector<32x8xf32>, vector<8x8xf32> -> vector<8x8xf32>
    %c0_10 = arith.constant 0 : index
    %c0_11 = arith.constant 0 : index
    %c0_12 = arith.constant 0 : index
    %11 = vector.load %arg5[%c0_10, %c0_11, %c0_12] : memref<1x32x8xf32, #tpu.memory_space<vmem>>, vector<1x32x8xf32>
    %12 = vector.shape_cast %11 : vector<1x32x8xf32> to vector<32x8xf32>
    %cst_13 = arith.constant dense<0.000000e+00> : vector<8x8xf32>
    %13 = tpu.matmul %4, %12, %cst_13 {dimension_numbers = #tpu.dot_dimension_numbers<[1], [0], [0], [1], [0, 0, 1, 1], [], []>} : vector<8x32xf32>, vector<32x8xf32>, vector<8x8xf32> -> vector<8x8xf32>
    %cst_14 = arith.constant dense<0.000000e+00> : vector<8x8xf32>
    %14 = tpu.matmul %7, %10, %cst_14 {dimension_numbers = #tpu.dot_dimension_numbers<[1], [1], [0], [0], [0, 0, 1, 0], [], []>} : vector<8x8xf32>, vector<8x8xf32>, vector<8x8xf32> -> vector<8x8xf32>
    %cst_15 = arith.constant dense<0xFF800000> : vector<8xf32>
    %15 = vector.multi_reduction <maximumf>, %14, %cst_15 [1] : vector<8x8xf32> to vector<8xf32>
    %16 = vector.shape_cast %15 : vector<8xf32> to vector<8x1xf32>
    %17 = vector.broadcast %16 : vector<8x1xf32> to vector<8x8xf32>
    %18 = arith.subf %14, %17 : vector<8x8xf32>
    %19 = math.exp %18 : vector<8x8xf32>
    %cst_16 = arith.constant dense<0.000000e+00> : vector<8xf32>
    %20 = vector.multi_reduction <add>, %19, %cst_16 [1] : vector<8x8xf32> to vector<8xf32>
    %21 = vector.shape_cast %20 : vector<8xf32> to vector<8x1xf32>
    %cst_17 = arith.constant dense<0.000000e+00> : vector<8x8xf32>
    %22 = tpu.matmul %19, %13, %cst_17 {dimension_numbers = #tpu.dot_dimension_numbers<[1], [0], [0], [1], [0, 0, 1, 1], [], []>} : vector<8x8xf32>, vector<8x8xf32>, vector<8x8xf32> -> vector<8x8xf32>
    %23 = tpu.reciprocal %21 {approx = true} : vector<8x1xf32> -> vector<8x1xf32>
    %24 = vector.broadcast %23 : vector<8x1xf32> to vector<8x8xf32>
    %25 = arith.mulf %22, %24 : vector<8x8xf32>
    %c0_18 = arith.constant 0 : index
    %c0_19 = arith.constant 0 : index
    %26 = vector.load %arg9[%c0_18, %c0_19] : memref<8x32xf32, #tpu.memory_space<vmem>>, vector<8x32xf32>
    %c0_20 = arith.constant 0 : index
    %c0_21 = arith.constant 0 : index
    %c0_22 = arith.constant 0 : index
    %27 = vector.load %arg6[%c0_20, %c0_21, %c0_22] : memref<1x8x32xf32, #tpu.memory_space<vmem>>, vector<1x8x32xf32>
    %28 = vector.shape_cast %27 : vector<1x8x32xf32> to vector<8x32xf32>
    %cst_23 = arith.constant dense<0.000000e+00> : vector<8x32xf32>
    %29 = tpu.matmul %25, %28, %cst_23 {dimension_numbers = #tpu.dot_dimension_numbers<[1], [0], [0], [1], [0, 0, 1, 1], [], []>} : vector<8x8xf32>, vector<8x32xf32>, vector<8x32xf32> -> vector<8x32xf32>
    %30 = arith.addf %26, %29 : vector<8x32xf32>
    %c0_24 = arith.constant 0 : index
    %c0_25 = arith.constant 0 : index
    %31 = vector.load %arg9[%c0_24, %c0_25] : memref<8x32xf32, #tpu.memory_space<vmem>>, vector<8x32xf32>
    tpu.vector_store %arg9[%c0_24, %c0_25], %30 {strides = array<i32>} : memref<8x32xf32, #tpu.memory_space<vmem>>, vector<8x32xf32>,
    %c3_i32 = arith.constant 3 : i32
    %32 = arith.cmpi eq, %arg1, %c3_i32 : i32
    %33 = arith.extui %32 : i1 to i32
    %c0_i32_26 = arith.constant 0 : i32
    %34 = arith.cmpi ne, %33, %c0_i32_26 : i32
    scf.if %34 {
      %c0_27 = arith.constant 0 : index
      %c0_28 = arith.constant 0 : index
      %35 = vector.load %arg9[%c0_27, %c0_28] : memref<8x32xf32, #tpu.memory_space<vmem>>, vector<8x32xf32>
      %c0_29 = arith.constant 0 : index
      %c0_30 = arith.constant 0 : index
      %36 = vector.load %arg7[%c0_29, %c0_30] : memref<1x32xf32, #tpu.memory_space<vmem>>, vector<1x32xf32>
      %37 = vector.broadcast %36 : vector<1x32xf32> to vector<8x32xf32>
      %38 = arith.addf %35, %37 : vector<8x32xf32>
      %c0_31 = arith.constant 0 : index
      %c0_32 = arith.constant 0 : index
      %c0_33 = arith.constant 0 : index
      %39 = vector.load %arg8[%c0_31, %c0_32, %c0_33] : memref<1x8x32xf32, #tpu.memory_space<vmem>>, vector<1x8x32xf32>
      %40 = vector.shape_cast %39 : vector<1x8x32xf32> to vector<8x32xf32>
      %41 = vector.shape_cast %38 : vector<8x32xf32> to vector<1x8x32xf32>
      tpu.vector_store %arg8[%c0_31, %c0_32, %c0_33], %41 {strides = array<i32>} : memref<1x8x32xf32, #tpu.memory_space<vmem>>, vector<1x8x32xf32>,
    } else {
    }
    return
  }
  func.func @transform_0(%arg0: i32, %arg1: i32) -> (i32, i32, i32) {
    %c0_i32 = arith.constant 0 : i32
    %c0_i32_0 = arith.constant 0 : i32
    %c0_i32_1 = arith.constant 0 : i32
    return %arg0, %c0_i32, %c0_i32_0 : i32, i32, i32
  }
  func.func @transform_1(%arg0: i32, %arg1: i32) -> (i32, i32, i32) {
    %c0_i32 = arith.constant 0 : i32
    %c0_i32_0 = arith.constant 0 : i32
    %c0_i32_1 = arith.constant 0 : i32
    return %arg1, %c0_i32, %c0_i32_0 : i32, i32, i32
  }
  func.func @transform_2(%arg0: i32, %arg1: i32) -> (i32, i32, i32) {
    %c0_i32 = arith.constant 0 : i32
    %c0_i32_0 = arith.constant 0 : i32
    %c0_i32_1 = arith.constant 0 : i32
    return %arg1, %c0_i32, %c0_i32_0 : i32, i32, i32
  }
  func.func @transform_3(%arg0: i32, %arg1: i32) -> (i32, i32, i32) {
    %c0_i32 = arith.constant 0 : i32
    %c0_i32_0 = arith.constant 0 : i32
    %c0_i32_1 = arith.constant 0 : i32
    return %arg1, %c0_i32, %c0_i32_0 : i32, i32, i32
  }
  func.func @transform_4(%arg0: i32, %arg1: i32) -> (i32, i32, i32) {
    %c0_i32 = arith.constant 0 : i32
    %c0_i32_0 = arith.constant 0 : i32
    %c0_i32_1 = arith.constant 0 : i32
    return %arg1, %c0_i32, %c0_i32_0 : i32, i32, i32
  }
  func.func @transform_5(%arg0: i32, %arg1: i32) -> (i32, i32) {
    %c0_i32 = arith.constant 0 : i32
    %c0_i32_0 = arith.constant 0 : i32
    %c0_i32_1 = arith.constant 0 : i32
    return %c0_i32, %c0_i32_0 : i32, i32
  }
  func.func @transform_6(%arg0: i32, %arg1: i32) -> (i32, i32, i32) {
    %c0_i32 = arith.constant 0 : i32
    %c0_i32_0 = arith.constant 0 : i32
    %c0_i32_1 = arith.constant 0 : i32
    return %arg0, %c0_i32, %c0_i32_0 : i32, i32, i32
  }
}

</mosaic_0001>

<bundles_post_ra>
// kernel: tpu_custom_call.1
= control target key start
LH: loop header
LB: loop body
LE: loop exit
PB: predicated region body
PF: predicated region fallthrough
CT: control target
= control target key end

     0   :  { %11 = vsyncpa [#allocation4], 0  ;;  %s1471_s0 = inlined_call_operand.vmem [shape: f32[2,8,32], index: 0, kind: input, shape index: {}]   ;;  %s1472_s1 = inlined_call_operand.vmem [shape: f32[4,32,8], index: 1, kind: input, shape index: {}]   ;;  %s1473_s2 = inlined_call_operand.vmem [shape: f32[4,32,8], index: 2, kind: input, shape index: {}]   ;;  %s1474_s3 = inlined_call_operand.vmem [shape: f32[4,32,8], index: 3, kind: input, shape index: {}]   ;;  %s1475_s4 = inlined_call_operand.vmem [shape: f32[4,8,32], index: 4, kind: input, shape index: {}]   ;;  %s1476_s5 = inlined_call_operand.vmem [shape: f32[1,32], index: 5, kind: input, shape index: {}]   ;;  %s1477_s6 = inlined_call_operand.hbm [shape: f32[2,8,32], index: 6, kind: output, shape index: {}]  }
   0x1   :  { %13 = vsyncpa [#allocation4 + $0x1], 0  ;;  %s1286_s21 = smov 0   ;;  %s1288_s22 = smov 0  }
   0x2   :  { %s1290_s23 = smov 0   ;;  %s1292_s24 = smov 0  }
   0x3   :  { %s1294_s25 = smov 0   ;;  %s1296_s26 = smov 0  }
   0x4   :  { %s1298_s27 = smov 0   ;;  %s1300_s28 = smov 0  }
   0x5 LB: > { %1485 = sst [smem:[#allocation6_spill]] %s1216_s21  ;;  %s953_s29 = sadd.s32 4294967295, %s1244_s28   ;;  %s1244_s28 = sphi %s1300_s28, %s19_s28   ;;  %s1240_s27 = sphi %s1298_s27, %s1503_s27   ;;  %s1236_s26 = sphi %s1296_s26, %s1506_s26   ;;  %s1232_s25 = sphi %s1294_s25, %s1501_s25   ;;  %s1228_s24 = sphi %s1292_s24, %s1500_s24   ;;  %s1224_s23 = sphi %s1290_s23, %s1499_s23   ;;  %s1220_s22 = sphi %s1288_s22, %s1505_s22   ;;  %s1216_s21 = sphi %s1286_s21, %s1504_s21  }
   0x6   : > { %1486 = sst [smem:[#allocation7_spill]] %s1224_s23  ;;  %s954_s30 = sadd.s32 4294967294, %s1244_s28  }
   0x7   : > { %1487 = sst [smem:[#allocation8_spill]] %s1236_s26  ;;  %s28_s7 = sadd.s32 1, %s1236_s26 }
   0x8   : > { %1488 = sst [smem:[#allocation9_spill]] %s1240_s27  ;;  %p29_p0 = scmp.ge.s32.totalorder %s28_s7, 4 }
   0x9   : > { %s31_s8 = sadd.s32 1, %s1240_s27  ;;  %p199_p1 = scmp.ne.s32.totalorder %s1224_s23, %s1220_s22 }
   0xa   : > { %p200_p2 = scmp.eq.s32.totalorder %s953_s29, 7  ;;  %s1508_s7 = smov (%p29_p0, %s28_s7), 0 }
   0xb   : > { %1489 = sst [smem:[#allocation10_spill]] %s1508_s7  ;;  %s1510_s8 = smov (!%p29_p0, %s31_s8), %s1240_s27 }
   0xc   : > { %p1335_p3 = por %p200_p2, %p199_p1  ;;  %p205_p4 = scmp.ne.s32.totalorder %s1220_s22, %s1216_s21 }
   0xd   : > { %p33_p5 = scmp.ge.s32.totalorder %s1510_s8, 2  ;;  %p206_p6 = scmp.eq.s32.totalorder %s954_s30, 7 }
   0xe   : > { %p957_p7 = scmp.ge.s32.totalorder %s1244_s28, 1  ;;  %p265_p8 = scmp.lt.s32.totalorder %s1244_s28, 9 }
   0xf   : > { %s1512_s8 = smov (%p33_p5, %s1510_s8), 0  ;;  %p1345_p9 = por %p206_p6, %p205_p4 }
  0x10   : > { %1491 = sst [smem:[#allocation11_spill]] %s1512_s8  ;;  %p266_p10 = pnand %p957_p7, %p265_p8 }
  0x11   : > { %s1492_s10 = scalar_select %p1345_p9, 1, 0 }
  0x12   : > { %s186_s11 = ssub.s32 %s1240_s27, %s1512_s8  ;;  %s189_s12 = sadd.s32 1, %s1224_s23 }
  0x13   : > { %1493 = sst [smem:[#allocation12_spill]] %s1492_s10  ;;  %p187_p11 = scmp.eq.s32.totalorder %s186_s11, 0 }
  0x14   : > { %269 = sbr.rel (%p266_p10) target bundleno = 1095 (0x447), region = 44  ;;  %s1480_s14 = sand.u32 (!%p266_p10), 1, %s1220_s22  }
  0x15   : > { %s1353_s13 = scalar_select %p187_p11, %s1224_s23, %s189_s12  }
  0x16   : > { %p313_p12 = scmp.lt.s32.totalorder (!%p266_p10), %s1232_s25, 1  ;;  %s1359_s15 = sshll.u32 (!%p266_p10), %s1480_s14, 3 }
  0x17   : > { %1494 = sst [smem:[#allocation13_spill]] %s1353_s13  ;;  %p317_p13 = scmp.lt.s32.totalorder (!%p266_p10), %s1228_s24, 3 }
  0x18   : > { %s312_s19 = scalar_lea.vmem (!%p266_p10), [#allocation3], %s1359_s15  ;;  %p967_p0 = scmp.ne.s32.totalorder (!%p266_p10), %s1228_s24, 0 }
  0x1b   : > { %s314_s16 = scalar_select %p313_p12, %s1232_s25, 1 }
  0x1c   : > { %s318_s17 = scalar_select %p317_p13, %s1228_s24, 3 }
  0x1d   : > { %s959_s18 = sshll.u32 %s314_s16, 3  ;;  %339 = sbr.rel (%p967_p0) target bundleno = 36 (0x24), region = 48  ;;  %vm340_vm0 = vcmask (!%p967_p0), 261120   ;;  %v1246_v0 = vmov (!%p967_p0), 0.0  }
  0x1e   : > { %s1367_s29 = scalar_lea.vmem %s1471_s0, %s959_s18  ;;  %s981_s30 = sshll.u32 %s318_s17, 5  ;;  %341 = vst.msk [vmem:[#allocation2] sm:$0xff] (!%p967_p0), %vm340_vm0, %v1246_v0 }
  0x1f   : > { %s321_s8 = scalar_lea.vmem %s1472_s1, %s981_s30  ;;  %s326_s14 = scalar_lea.vmem %s1473_s2, %s981_s30 }
  0x20   : > { %s1378_s23 = scalar_lea.vmem %s1474_s3, %s981_s30  ;;  %s966_s16 = sshll.u32 %s318_s17, 3 }
  0x21   : > { %s1383_s18 = scalar_lea.vmem %s1475_s4, %s966_s16 }
  0x24 PF: > { %v421_v1 = vld [vmem:[%s326_s14] sm:$0xff]  ;;  %v422_v2 = vld [vmem:[%s326_s14 + $0x8] sm:$0xff]  ;;  %v1247_v4 = vmov 0.0|0.0   ;;  %v423_v7 = vld [vmem:[%s326_s14 + $0x10] sm:$0xff]  ;;  %vm1248_vm1 = vmmov 0   ;;  %v1249_v10 = vmov 0.0  }
  0x25   : > { %v343_v3 = vld [vmem:[%s321_s8] sm:$0xff]  ;;  %1059 = vmatprep.subr.bf16.mxu1 %v1247_v4  ;;  %v1060_v5 = vpack.c.bf16 %v422_v2, %v421_v1  ;;  %1053 = vmatprep.subr.bf16.mxu0 %v1247_v4  ;;  %v344_v6 = vld [vmem:[%s321_s8 + $0x8] sm:$0xff]  ;;  %v424_v8 = vld [vmem:[%s326_s14 + $0x18] sm:$0xff]  ;;  %vm347_vm2 = vcmask 261120   ;;  %vm569_vm3 = vcmask 64512   ;;  %p975_p1 = scmp.ne.s32.totalorder %s1228_s24, 3 }
  0x26   : > { %v1054_v9 = vpack.c.bf16 %v344_v6, %v343_v3  ;;  %1024 = vmatprep.mubr.msk.f32.mxu1 %vm1248_vm1, %v1249_v10  ;;  %v345_v11 = vld [vmem:[%s321_s8 + $0x10] sm:$0xff]  ;;  %v346_v12 = vld [vmem:[%s321_s8 + $0x18] sm:$0xff]  ;;  %1013 = vmatprep.mubr.msk.f32.mxu0 %vm1248_vm1, %v1249_v10  ;;  %v1063_v13 = vpack.c.bf16 %v424_v8, %v423_v7  ;;  %v342_v15 = vld [vmem:[%s1367_s29] sm:$0xff] }
  0x27   : > { %1061 = vmatpush3.bf16.msra.mxu1 %v1060_v5  ;;  %v1057_v14 = vpack.c.bf16 %v346_v12, %v345_v11  ;;  %v495_v16 = vld [vmem:[%s1378_s23] sm:$0xff]  ;;  %v496_v17 = vld [vmem:[%s1378_s23 + $0x8] sm:$0xff]  ;;  %v497_v18 = vld [vmem:[%s1378_s23 + $0x10] sm:$0xff] }
  0x28   : > { %1055 = vmatpush3.bf16.msra.mxu0 %v1054_v9  ;;  %1062 = vmatprep.subr.bf16.mxu1 %v1247_v4  ;;  %v1066_v19 = vpack.c.bf16 %v496_v17, %v495_v16  ;;  %v498_v20 = vld [vmem:[%s1378_s23 + $0x18] sm:$0xff]  ;;  %v731_v36 = vld [vmem:[%s1383_s18] sm:$0xff] }
  0x29   : > { %1056 = vmatprep.subr.bf16.mxu0 %v1247_v4  ;;  %v1069_v21 = vpack.c.bf16 %v498_v20, %v497_v18  ;;  %v730_v42 = vld [vmem:[#allocation2] sm:$0xff] }
  0x2a   : > { %v976_v47 = vld [vmem:[%s1476_s5] ss:$0 sm:$0xff] (!%p975_p1) }
  0x2b   : > { %1064 = vmatpush3.bf16.msra.mxu1 %v1063_v13 }
  0x2c   : > { %1058 = vmatpush3.bf16.msra.mxu0 %v1057_v14  ;;  %1038 = vmatprep.subr.mxu1 %v1249_v10 }
  0x2d   : > { %1065 = vmatprep.subr.bf16.mxu0 %v1247_v4 }
  0x2e   : > { %1025 = vmatmul.mubr.msk.f32.vlgmr.msra.gmra.mrb[0].mxu1 %vm347_vm2, %v342_v15 }
  0x2f   : > { %1014 = vmatmul.mubr.msk.f32.vlgmr.msra.gmra.mrb[0].mxu0 %vm347_vm2, %v342_v15  ;;  %1040 = vmatprep.mubr.msk.f32.mxu1 %vm1248_vm1, %v1249_v10 }
  0x30   : > { %1035 = vmatprep.mubr.msk.f32.mxu0 %vm1248_vm1, %v1249_v10  ;;  %1067 = vmatpush3.bf16.msra.mxu0 %v1066_v19 }
  0x31   : > { %1068 = vmatprep.subr.bf16.mxu0 %v1247_v4 }
  0x34   : > { %1070 = vmatpush3.bf16.msra.mxu0 %v1069_v21 }
  0x35   : > { %1048 = vmatprep.subr.mxu0 %v1249_v10 }
  0x37   : > { %1036 = vmatmul.mubr.msk.f32.vlgmr.msra.gmra.mrb[2].mxu0 %vm347_vm2, %v342_v15 }
  0x38   : > { %1050 = vmatprep.mubr.msk.f32.mxu0 %vm1248_vm1, %v1249_v10  ;;  %1049 = vmatpush3.msra.mxu0 %v731_v36 }
 0x101   : > { %v491_v22 = vpop.f32.mrb[0].mxu1 }
 0x102   : > { %v1026_v23 = vpop.f32.mrb[1].mxu1  ;;  %1039 = vmatpush3.xpose.msk.msra.mxu1 %vm569_vm3, %v491_v22  ;;  %v417_v24 = vpop.f32.mrb[0].mxu0 }
 0x103   : > { %v1015_v25 = vpop.f32.mrb[1].mxu0  ;;  %1043 = vmatprep.subr.mxu1 %v1249_v10 }
 0x105   : > { %1041 = vmatmul.mubr.msk.f32.vlgmr.msra.gmra.mrb[2].mxu1 %vm569_vm3, %v417_v24 }
 0x106   : > { %1045 = vmatprep.mubr.msk.f32.mxu1 %vm1248_vm1, %v1249_v10 }
 0x10a   : > { %v565_v29 = vpop.f32.mrb[2].mxu0 }
 0x10b   : > { %v1037_v30 = vpop.f32.mrb[3].mxu0  ;;  %1044 = vmatpush3.msra.mxu1 %v565_v29 }
 0x1d8   : > { %v642_v26 = vpop.f32.mrb[2].mxu1 }
 0x1d9   : > { %v1042_v27 = vpop.f32.mrb[3].mxu1  ;;  %v646_v28 = vsel %vm569_vm3, %v642_v26, -inf }
 0x1da   : > { %647 = vmax.xlane.f32.xlu0 %v646_v28 }
 0x267   : > { %v648_v31 = vpop.xlane.xlu0 %647 }
 0x268   : > { %v649_v32 = vsub.f32 %v642_v26, %v648_v31 }
 0x26a   : > { %v650_v33 = vmul.f32 1.442695, %v649_v32 }
 0x26c   : > { %1146 = vpow2.f32 %v650_v33 }
 0x276   : > { %v1147_v34 = vpop.eup %1146 }
 0x277   : > { %1046 = vmatmul.mubr.msk.f32.vlgmr.msra.gmra.mrb[4].mxu1 %vm569_vm3, %v1147_v34  ;;  %v652_v35 = vsel %vm569_vm3, %v1147_v34, 0.0 }
 0x278   : > { %653 = vadd.xlane.f32.xlu0 %v652_v35 }
 0x305   : > { %v654_v37 = vpop.xlane.xlu0 %653 }
 0x306   : > { %1148 = vrcp.f32 %v654_v37 }
 0x310   : > { %v1149_v38 = vpop.eup %1148 }
 0x34a   : > { %v724_v39 = vpop.f32.mrb[4].mxu1 }
 0x34b   : > { %v729_v40 = vmul.f32 %v1149_v38, %v724_v39  ;;  %v1047_v41 = vpop.f32.mrb[5].mxu1 }
 0x34d   : > { %1051 = vmatmul.mubr.msk.f32.vlgmr.msra.gmra.mrb[4].mxu0 %vm569_vm3, %v729_v40 }
 0x41d   : > { %810 = sbr.rel (%p975_p1) target bundleno = 1070 (0x42e), region = 52 }
 0x420   : > { %v801_v43 = vpop.f32.mrb[4].mxu0 }
 0x421   : > { %v805_v44 = vadd.f32 %v801_v43, %v730_v42  ;;  %v1052_v45 = vpop.f32.mrb[5].mxu0 }
 0x423   : > { %806 = vst.msk [vmem:[#allocation2] sm:$0xff] %vm347_vm2, %v805_v44 }
 0x42a   : > { %v811_v46 = vld [vmem:[#allocation2] sm:$0xff] }
 0x42b   : > { %v819_v48 = vadd.f32 %v976_v47, %v811_v46 }
 0x42d   : > { %820 = vst.msk [vmem:[%s312_s19] sm:$0xff] %vm347_vm2, %v819_v48 }
 0x42e PF: > { %s978_s26 = sshll.u32 %s1232_s25, 7  ;;  %s835_s8 = sshll.u32 %s312_s19, 4  ;;  %s836_s8 = int_to_ptr.vmem [resolvable:$true] %s835_s8 }
 0x42f   : > { %s1420_s24 = scalar_lea.hbm %s1477_s6, %s978_s26  ;;  %s1495_s10 = sand.u32 1, %s1220_s22  }
 0x430   : > { %s822_s13 = scalar_lea.sflag [#allocation4], %s1495_s10  ;;  %s1150_s14 = scalar_lea.vmem %s836_s8, 128 }
 0x431   : > { %p1151_p2 = scmp.ne.s32.totalorder %s836_s8, %s1150_s14  ;;  %s1250_s17 = smov [#allocation3]  }
 0x432   : > { %s1154_s20 = sshll.u32 %s1250_s17, 4  ;;  %s1155_s20 = int_to_ptr.vmem [resolvable:$false] %s1154_s20 }
 0x433   : > { %p1152_p4 = pnand %p1151_p2, %p1335_p3  ;;  %s1156_s29 = scalar_lea.vmem %s1155_s20, 256 }
 0x434   : > { %p1157_p6 = scmp.lt.s32.totalorder %s836_s8, %s1155_s20  ;;  %p1158_p7 = scmp.lt.s32.totalorder %s1156_s29, %s1150_s14 }
 0x435   : > { %p1153_p5 = pneg %p1152_p4 }
 0x436   : > { %p1159_p8 = por %p1158_p7, %p1157_p6 }
 0x438   : > { %p1160_p10 = pnand %p1159_p8, %p1153_p5 }
 0x43a   : > { %1163 = shalt.err (!%p1160_p10)
}
 0x43b   : > { %s1164_s25 = scalar_lea.hbm %s1420_s24, 128  ;;  %s1168_s11 = scalar_lea.hbm %s1477_s6, 256 }
 0x43c   : > { %p1165_p11 = scmp.ne.s32.totalorder %s1420_s24, %s1164_s25  ;;  %p1169_p0 = scmp.lt.u32.totalorder %s1420_s24, %s1477_s6 }
 0x43d   : > { %p1170_p1 = scmp.lt.u32.totalorder %s1168_s11, %s1164_s25  ;;  %p1172_p4 = scmp.lt.u32.totalorder %s1164_s25, %s1420_s24 }
 0x43e   : > { %p1166_p12 = pnand %p1165_p11, %p1335_p3 }
 0x43f   : > { %p1171_p2 = por %p1170_p1, %p1169_p0 }
 0x440   : > { %p1167_p13 = pneg %p1166_p12 }
 0x441   : > { %p1173_p5 = por %p1172_p4, %p1171_p2 }
 0x443   : > { %p1174_p6 = pnand %p1173_p5, %p1167_p13 }
 0x445   : > { %1177 = shalt.err (!%p1174_p6)
}
 0x446   : > { %1071 = dma.vmem_to_hbm [thread:$0]  (%p1335_p3), %s836_s8, 128, %s1420_s24, %s822_s13  }
 0x447 PF: > { %s1496_s18 = sld [smem:[#allocation6_spill]]  ;;  %p1077_p7 = scmp.ge.s32.totalorder %s1244_s28, 2 }
 0x449   : > { %p1074_p8 = pnand %p1077_p7, %p1345_p9 }
 0x44d   : > { %s847_s21 = sand.u32 1, %s1496_s18  }
 0x44e   : > { %s848_s23 = scalar_lea.sflag [#allocation4], %s847_s21 }
 0x44f   : > { %1211 = dma.done.wait (!%p1074_p8), %s848_s23, 128  }
 0x450   : > { %1213 = vsyncadd (!%p1074_p8), %s848_s23, 4294967168  ;;  %s19_s28 = sadd.s32 1, %s1244_s28   ;;  %s1498_s26 = sld [smem:[#allocation7_spill]] }
 0x451   : > { %p16_p10 = scmp.ge.s32.totalorder %s19_s28, 10   ;;  %s1499_s23 = sld [smem:[#allocation13_spill]] }
 0x452   : > { %s1500_s24 = sld [smem:[#allocation8_spill]]  ;;  %s1501_s25 = sld [smem:[#allocation9_spill]] }
 0x453   : > { %s1502_s9 = sld [smem:[#allocation10_spill]]  ;;  %s1503_s27 = sld [smem:[#allocation11_spill]] }
 0x454   : > { %s1504_s21 = smov %s1220_s22  ;;  %18 = sbr.rel (!%p16_p10) target bundleno = 5 (0x5), region = 99 }
 0x456   : > { %s1505_s22 = smov %s1498_s26 }
 0x459   : > { %s1506_s26 = smov %s1502_s9 }
 0x45b   :  { %853 = vsyncpa [#allocation4], 1 }
 0x45c   :  { %855 = vsyncpa [#allocation4 + $0x1], 1 }

</bundles_post_ra>
